<compile_context>
chip_gen: v7x
topology: tpu7x:2x2x1
jax: 0.10.0
libtpu: 0.0.40
codegen_flags: <defaults>
</compile_context>

<pallas_src>
import math

import jax
import jax.numpy as jnp
from jax.experimental import pallas as pl
from jax.experimental.pallas import tpu as pltpu


def _round_up(v, m):
    return ((v + m - 1) // m) * m


def player_graph_kernel(a_ref, x_ref, w_ref, b_ref, nv_ref, out_ref):
    """One frame-window: 4x (GCNConv + ReLU) + per-graph global max pool.

    Per grid step (window):
      a_ref  : [1, F, P, P]   bf16  per-graph normalized adjacency (block-diag batch)
      x_ref  : [1, F, P, Cin] bf16  node features (padding nodes/graphs are zero)
      w_ref  : [L, C, C]      bf16  zero-padded weight slab (resident across windows)
      b_ref  : [L, C]         f32   zero-padded biases (resident)
      nv_ref : [1, F, P, 1]   f32   node validity (0 for padding nodes / graphs)
      out_ref: [1, F, C]      f32   pooled per-graph features (padding graphs -> 0)
    """
    a = a_ref[0]                                   # [F, P, P] bf16
    f, p = a.shape[0], a.shape[1]
    c = w_ref.shape[2]
    n_layers = w_ref.shape[0]

    h_bf = x_ref[0]                                # [F, P, Cin] bf16
    h_f32 = None
    for layer in range(n_layers):
        if layer > 0:
            # f32 -> reshape (tile-preserving: P multiple of 8) -> bf16 pack.
            h_bf = h_f32.reshape(f, p, c).astype(jnp.bfloat16)
        k = h_bf.shape[2]
        # Aggregate first (narrow channels, block-diagonal batched matmul) ...
        agg = jnp.einsum('fpq,fqc->fpc', a, h_bf,
                         preferred_element_type=jnp.float32)        # [F, P, k] f32
        # ... then project with the (sliced) packed weight slab.
        z = jnp.dot(agg.reshape(f * p, k).astype(jnp.bfloat16),
                    w_ref[layer, :k, :],
                    preferred_element_type=jnp.float32)             # [F*P, C] f32
        h_f32 = jnp.maximum(z + b_ref[layer:layer + 1, :], 0.0)     # + bias, ReLU

    # global_max_pool: post-ReLU activations are >= 0 and every real graph has
    # >= 1 valid node, so zeroing invalid (padding) nodes / graphs with the
    # validity column and taking the max is exact; padding graphs reduce to
    # exactly 0 == the required zero padding rows.  Single dense store.
    hm = h_f32.reshape(f, p, c) * nv_ref[0]                         # [F, P, C] f32
    out_ref[0] = jnp.max(hm, axis=1)                                # [F, C]


def init_params(key, feature_vector_size=8, feature_multiplier=1):
    """Deterministic synthetic GCNConv weights: W stored as [C_in, C_out]."""
    mult = 2 * feature_multiplier
    dims = [feature_vector_size, 8 * mult, 16 * mult, 32 * mult, 76 * mult]
    params = []
    for i in range(4):
        key, kw, kb = jax.random.split(key, 3)
        w = jax.random.normal(kw, (dims[i], dims[i + 1]), jnp.float32) / jnp.sqrt(dims[i])
        b = jax.random.normal(kb, (dims[i + 1],), jnp.float32) * 0.01
        params.append((w, b))
    return params


def player_graph_forward(x, edge_index, batch, params, *,
                         frames_per_window, num_graphs):
    N, c_in = x.shape
    out_c = params[-1][0].shape[1]                    # 152 * feature_multiplier
    n_layers = len(params)

    batch_size = math.ceil(num_graphs / frames_per_window)
    F = frames_per_window
    g_total = batch_size * F                          # graphs incl. zero-padding graphs

    # Requires PyG-style contiguous batching with a fixed node count per graph.
    # TODO(synk): ragged graphs -> per-graph node offsets via scalar prefetch.
    assert N % num_graphs == 0, "expected a fixed number of nodes per graph"
    P = N // num_graphs
    p_pad = _round_up(max(P, 1), 8)                   # sublane-aligned nodes / graph

    # Uniform lane-aligned channel width covering every layer's fan-in / fan-out.
    c_pad = _round_up(max(max(w.shape[0] for w, _ in params),
                          max(w.shape[1] for w, _ in params)), 128)

    # ---- glue: per-graph normalized adjacency with self loops (block-diagonal
    # batch [G, P_pad, P_pad]; duplicate edges accumulate as in gcn_norm) -------
    src, dst = edge_index[0], edge_index[1]
    g_edge = batch[dst]                               # edges are within-graph (PyG Batch)
    row = dst - g_edge * P
    col = src - g_edge * P
    adj = jnp.zeros((num_graphs, p_pad, p_pad), jnp.float32)
    adj = adj.at[g_edge, row, col].add(1.0)
    adj = adj + jnp.eye(p_pad, dtype=jnp.float32)[None]   # self loops -> deg >= 1
    dinv = jax.lax.rsqrt(jnp.sum(adj, axis=2))
    a_hat = adj * dinv[:, :, None] * dinv[:, None, :]
    a_hat = jnp.pad(a_hat, ((0, g_total - num_graphs), (0, 0), (0, 0)))
    a_hat = a_hat.reshape(batch_size, F, p_pad, p_pad).astype(jnp.bfloat16)

    # ---- glue: node features [B, F, P_pad, C_in] bf16 (padding rows zero) ------
    x_nodes = jnp.zeros((g_total, p_pad, c_in), jnp.float32)
    x_nodes = x_nodes.at[:num_graphs, :P, :].set(x.reshape(num_graphs, P, c_in))
    x_nodes = x_nodes.reshape(batch_size, F, p_pad, c_in).astype(jnp.bfloat16)

    # ---- glue: node validity (0 for padding nodes and padding graphs) ---------
    node_ok = (jnp.arange(p_pad) < P)[None, :]
    graph_ok = (jnp.arange(g_total) < num_graphs)[:, None]
    node_valid = (node_ok & graph_ok).astype(jnp.float32)[:, :, None]
    node_valid = node_valid.reshape(batch_size, F, p_pad, 1)

    # ---- glue: one zero-padded bf16 weight slab + one f32 bias slab ------------
    w_slab = jnp.zeros((n_layers, c_pad, c_pad), jnp.float32)
    b_slab = jnp.zeros((n_layers, c_pad), jnp.float32)
    for i, (w, b) in enumerate(params):
        w_slab = w_slab.at[i, :w.shape[0], :w.shape[1]].set(w)
        b_slab = b_slab.at[i, :b.shape[0]].set(b)
    w_slab = w_slab.astype(jnp.bfloat16)

    pooled = pl.pallas_call(
        player_graph_kernel,
        out_shape=jax.ShapeDtypeStruct((batch_size, F, c_pad), jnp.float32),
        grid=(batch_size,),
        in_specs=[
            pl.BlockSpec((1, F, p_pad, p_pad), lambda w_idx: (w_idx, 0, 0, 0)),
            pl.BlockSpec((1, F, p_pad, c_in), lambda w_idx: (w_idx, 0, 0, 0)),
            pl.BlockSpec((n_layers, c_pad, c_pad), lambda w_idx: (0, 0, 0)),  # resident
            pl.BlockSpec((n_layers, c_pad), lambda w_idx: (0, 0)),            # resident
            pl.BlockSpec((1, F, p_pad, 1), lambda w_idx: (w_idx, 0, 0, 0)),
        ],
        out_specs=pl.BlockSpec((1, F, c_pad), lambda w_idx: (w_idx, 0, 0)),
        compiler_params=pltpu.CompilerParams(
            dimension_semantics=("parallel",),     # v7x: windows split across TCs
            vmem_limit_bytes=32 * 1024 * 1024),
    )(a_hat, x_nodes, w_slab, b_slab, node_valid)

    # ---- glue: drop padded lanes; padding-graph rows are already exactly 0 -----
    return pooled[:, :, :out_c]


def reference_forward(x, edge_index, batch, params, *, frames_per_window, num_graphs):
    """Pure-JAX f32 reference (dense formulation) of the PyTorch module."""
    N = x.shape[0]
    src, dst = edge_index[0], edge_index[1]
    adj = jnp.zeros((N, N), jnp.float32).at[dst, src].add(1.0) + jnp.eye(N, dtype=jnp.float32)
    dinv = jax.lax.rsqrt(jnp.sum(adj, axis=1))
    a_hat = adj * dinv[:, None] * dinv[None, :]
    h = x
    for w, b in params:
        h = jax.nn.relu(a_hat @ h @ w + b)
    out_c = h.shape[1]
    pooled = jnp.full((num_graphs, out_c), -jnp.inf, jnp.float32).at[batch].max(h)
    batch_size = math.ceil(num_graphs / frames_per_window)
    expected = batch_size * frames_per_window
    pooled = jnp.concatenate(
        [pooled, jnp.zeros((expected - num_graphs, out_c), jnp.float32)], axis=0)
    return pooled.reshape(batch_size, frames_per_window, out_c)


if __name__ == "__main__":
    key = jax.random.PRNGKey(0)
    key, kx = jax.random.split(key)

    # Small synthetic "player graph" batch: 6 frame-graphs, 5 players each.
    num_graphs = 6
    nodes_per_graph = 5
    frames_per_window = 4
    feature_vector_size = 8
    N = num_graphs * nodes_per_graph

    x = jax.random.normal(kx, (N, feature_vector_size), jnp.float32)
    batch = jnp.repeat(jnp.arange(num_graphs, dtype=jnp.int32), nodes_per_graph)

    # Fully-connected (clique) edges inside every graph, both directions.
    srcs, dsts = [], []
    for g in range(num_graphs):
        base = g * nodes_per_graph
        for i in range(nodes_per_graph):
            for j in range(nodes_per_graph):
                if i != j:
                    srcs.append(base + i)
                    dsts.append(base + j)
    edge_index = jnp.array([srcs, dsts], dtype=jnp.int32)

    params = init_params(key, feature_vector_size=feature_vector_size,
                         feature_multiplier=1)

    out = player_graph_forward(x, edge_index, batch, params,
                               frames_per_window=frames_per_window,
                               num_graphs=num_graphs)
    out = jax.block_until_ready(out)
    assert out.shape == (2, frames_per_window, 152), out.shape
    assert bool(jnp.all(jnp.isfinite(out)))

    # bf16 MXU operands vs f32 reference -> generous tolerance.
    ref = reference_forward(x, edge_index, batch, params,
                            frames_per_window=frames_per_window,
                            num_graphs=num_graphs)
    max_err = float(jnp.max(jnp.abs(out - ref)))
    assert bool(jnp.allclose(out, ref, rtol=1e-1, atol=1e-1)), max_err

    print("KERNEL_OK")
</pallas_src>

<mosaic_0001>
module attributes {stable_mosaic.version = 11 : i64} {
  func.func @player_graph_kernel(%arg0: i32, %arg1: memref<1x4x8x8xbf16, #tpu.memory_space<vmem>>, %arg2: memref<1x4x8x8xbf16, #tpu.memory_space<vmem>>, %arg3: memref<4x256x256xbf16, #tpu.memory_space<vmem>>, %arg4: memref<4x256xf32, #tpu.memory_space<vmem>>, %arg5: memref<1x4x8x1xf32, #tpu.memory_space<vmem>>, %arg6: memref<1x4x256xf32, #tpu.memory_space<vmem>>) attributes {dimension_semantics = [#tpu.dimension_semantics<parallel>], iteration_bounds = array<i64: 2>, scalar_prefetch = 0 : i64, scratch_operands = 0 : i64, tpu.core_type = #tpu.core_type<tc>, window_params = [{transform_indices = @transform_0, window_bounds = array<i64: 1, 4, 8, 8>}, {transform_indices = @transform_1, window_bounds = array<i64: 1, 4, 8, 8>}, {pipeline_mode = #tpu.pipeline_mode<synchronous>, transform_indices = @transform_2, window_bounds = array<i64: 4, 256, 256>}, {pipeline_mode = #tpu.pipeline_mode<synchronous>, transform_indices = @transform_3, window_bounds = array<i64: 4, 256>}, {transform_indices = @transform_4, window_bounds = array<i64: 1, 4, 8, 1>}, {transform_indices = @transform_5, window_bounds = array<i64: 1, 4, 256>}]} {
    %c0 = arith.constant 0 : index
    %c0_0 = arith.constant 0 : index
    %c0_1 = arith.constant 0 : index
    %c0_2 = arith.constant 0 : index
    %0 = vector.load %arg1[%c0, %c0_0, %c0_1, %c0_2] : memref<1x4x8x8xbf16, #tpu.memory_space<vmem>>, vector<1x4x8x8xbf16>
    %1 = vector.shape_cast %0 : vector<1x4x8x8xbf16> to vector<4x8x8xbf16>
    %c0_3 = arith.constant 0 : index
    %c0_4 = arith.constant 0 : index
    %c0_5 = arith.constant 0 : index
    %c0_6 = arith.constant 0 : index
    %2 = vector.load %arg2[%c0_3, %c0_4, %c0_5, %c0_6] : memref<1x4x8x8xbf16, #tpu.memory_space<vmem>>, vector<1x4x8x8xbf16>
    %3 = vector.shape_cast %2 : vector<1x4x8x8xbf16> to vector<4x8x8xbf16>
    "tpu.trace_start"() <{level = 10 : i32, message = "fpq,fqc->fpc"}> : () -> ()
    %cst = arith.constant dense<0.000000e+00> : vector<4x8x8xf32>
    %4 = tpu.matmul %1, %3, %cst {dimension_numbers = #tpu.dot_dimension_numbers<[2], [1], [1], [2], [0, 0, 0, 1, 1, 2], [0], [0]>} : vector<4x8x8xbf16>, vector<4x8x8xbf16>, vector<4x8x8xf32> -> vector<4x8x8xf32>
    "tpu.trace_stop"() : () -> ()
    %5 = vector.shape_cast %4 : vector<4x8x8xf32> to vector<32x8xf32>
    %6 = arith.truncf %5 : vector<32x8xf32> to vector<32x8xbf16>
    %c0_7 = arith.constant 0 : index
    %c0_8 = arith.constant 0 : index
    %c0_9 = arith.constant 0 : index
    %7 = vector.load %arg3[%c0_7, %c0_8, %c0_9] : memref<4x256x256xbf16, #tpu.memory_space<vmem>>, vector<1x8x256xbf16>
    %8 = vector.shape_cast %7 : vector<1x8x256xbf16> to vector<8x256xbf16>
    %cst_10 = arith.constant dense<0.000000e+00> : vector<32x256xf32>
    %9 = tpu.matmul %6, %8, %cst_10 {dimension_numbers = #tpu.dot_dimension_numbers<[1], [0], [0], [1], [0, 0, 1, 1], [], []>} : vector<32x8xbf16>, vector<8x256xbf16>, vector<32x256xf32> -> vector<32x256xf32>
    %c0_11 = arith.constant 0 : index
    %c0_12 = arith.constant 0 : index
    %10 = vector.load %arg4[%c0_11, %c0_12] : memref<4x256xf32, #tpu.memory_space<vmem>>, vector<1x256xf32>
    %11 = vector.broadcast %10 : vector<1x256xf32> to vector<32x256xf32>
    %12 = arith.addf %9, %11 : vector<32x256xf32>
    %cst_13 = arith.constant 0.000000e+00 : f32
    %13 = vector.broadcast %cst_13 : f32 to vector<32x256xf32>
    %14 = arith.maximumf %12, %13 : vector<32x256xf32>
    %15 = vector.shape_cast %14 : vector<32x256xf32> to vector<4x8x256xf32>
    %16 = arith.truncf %15 : vector<4x8x256xf32> to vector<4x8x256xbf16>
    "tpu.trace_start"() <{level = 10 : i32, message = "fpq,fqc->fpc"}> : () -> ()
    %cst_14 = arith.constant dense<0.000000e+00> : vector<4x8x256xf32>
    %17 = tpu.matmul %1, %16, %cst_14 {dimension_numbers = #tpu.dot_dimension_numbers<[2], [1], [1], [2], [0, 0, 0, 1, 1, 2], [0], [0]>} : vector<4x8x8xbf16>, vector<4x8x256xbf16>, vector<4x8x256xf32> -> vector<4x8x256xf32>
    "tpu.trace_stop"() : () -> ()
    %18 = vector.shape_cast %17 : vector<4x8x256xf32> to vector<32x256xf32>
    %19 = arith.truncf %18 : vector<32x256xf32> to vector<32x256xbf16>
    %c1 = arith.constant 1 : index
    %c0_15 = arith.constant 0 : index
    %c0_16 = arith.constant 0 : index
    %20 = vector.load %arg3[%c1, %c0_15, %c0_16] : memref<4x256x256xbf16, #tpu.memory_space<vmem>>, vector<1x256x256xbf16>
    %21 = vector.shape_cast %20 : vector<1x256x256xbf16> to vector<256x256xbf16>
    %cst_17 = arith.constant dense<0.000000e+00> : vector<32x256xf32>
    %22 = tpu.matmul %19, %21, %cst_17 {dimension_numbers = #tpu.dot_dimension_numbers<[1], [0], [0], [1], [0, 0, 1, 1], [], []>} : vector<32x256xbf16>, vector<256x256xbf16>, vector<32x256xf32> -> vector<32x256xf32>
    %c1_18 = arith.constant 1 : index
    %c0_19 = arith.constant 0 : index
    %23 = vector.load %arg4[%c1_18, %c0_19] : memref<4x256xf32, #tpu.memory_space<vmem>>, vector<1x256xf32>
    %24 = vector.broadcast %23 : vector<1x256xf32> to vector<32x256xf32>
    %25 = arith.addf %22, %24 : vector<32x256xf32>
    %cst_20 = arith.constant 0.000000e+00 : f32
    %26 = vector.broadcast %cst_20 : f32 to vector<32x256xf32>
    %27 = arith.maximumf %25, %26 : vector<32x256xf32>
    %28 = vector.shape_cast %27 : vector<32x256xf32> to vector<4x8x256xf32>
    %29 = arith.truncf %28 : vector<4x8x256xf32> to vector<4x8x256xbf16>
    "tpu.trace_start"() <{level = 10 : i32, message = "fpq,fqc->fpc"}> : () -> ()
    %cst_21 = arith.constant dense<0.000000e+00> : vector<4x8x256xf32>
    %30 = tpu.matmul %1, %29, %cst_21 {dimension_numbers = #tpu.dot_dimension_numbers<[2], [1], [1], [2], [0, 0, 0, 1, 1, 2], [0], [0]>} : vector<4x8x8xbf16>, vector<4x8x256xbf16>, vector<4x8x256xf32> -> vector<4x8x256xf32>
    "tpu.trace_stop"() : () -> ()
    %31 = vector.shape_cast %30 : vector<4x8x256xf32> to vector<32x256xf32>
    %32 = arith.truncf %31 : vector<32x256xf32> to vector<32x256xbf16>
    %c2 = arith.constant 2 : index
    %c0_22 = arith.constant 0 : index
    %c0_23 = arith.constant 0 : index
    %33 = vector.load %arg3[%c2, %c0_22, %c0_23] : memref<4x256x256xbf16, #tpu.memory_space<vmem>>, vector<1x256x256xbf16>
    %34 = vector.shape_cast %33 : vector<1x256x256xbf16> to vector<256x256xbf16>
    %cst_24 = arith.constant dense<0.000000e+00> : vector<32x256xf32>
    %35 = tpu.matmul %32, %34, %cst_24 {dimension_numbers = #tpu.dot_dimension_numbers<[1], [0], [0], [1], [0, 0, 1, 1], [], []>} : vector<32x256xbf16>, vector<256x256xbf16>, vector<32x256xf32> -> vector<32x256xf32>
    %c2_25 = arith.constant 2 : index
    %c0_26 = arith.constant 0 : index
    %36 = vector.load %arg4[%c2_25, %c0_26] : memref<4x256xf32, #tpu.memory_space<vmem>>, vector<1x256xf32>
    %37 = vector.broadcast %36 : vector<1x256xf32> to vector<32x256xf32>
    %38 = arith.addf %35, %37 : vector<32x256xf32>
    %cst_27 = arith.constant 0.000000e+00 : f32
    %39 = vector.broadcast %cst_27 : f32 to vector<32x256xf32>
    %40 = arith.maximumf %38, %39 : vector<32x256xf32>
    %41 = vector.shape_cast %40 : vector<32x256xf32> to vector<4x8x256xf32>
    %42 = arith.truncf %41 : vector<4x8x256xf32> to vector<4x8x256xbf16>
    "tpu.trace_start"() <{level = 10 : i32, message = "fpq,fqc->fpc"}> : () -> ()
    %cst_28 = arith.constant dense<0.000000e+00> : vector<4x8x256xf32>
    %43 = tpu.matmul %1, %42, %cst_28 {dimension_numbers = #tpu.dot_dimension_numbers<[2], [1], [1], [2], [0, 0, 0, 1, 1, 2], [0], [0]>} : vector<4x8x8xbf16>, vector<4x8x256xbf16>, vector<4x8x256xf32> -> vector<4x8x256xf32>
    "tpu.trace_stop"() : () -> ()
    %44 = vector.shape_cast %43 : vector<4x8x256xf32> to vector<32x256xf32>
    %45 = arith.truncf %44 : vector<32x256xf32> to vector<32x256xbf16>
    %c3 = arith.constant 3 : index
    %c0_29 = arith.constant 0 : index
    %c0_30 = arith.constant 0 : index
    %46 = vector.load %arg3[%c3, %c0_29, %c0_30] : memref<4x256x256xbf16, #tpu.memory_space<vmem>>, vector<1x256x256xbf16>
    %47 = vector.shape_cast %46 : vector<1x256x256xbf16> to vector<256x256xbf16>
    %cst_31 = arith.constant dense<0.000000e+00> : vector<32x256xf32>
    %48 = tpu.matmul %45, %47, %cst_31 {dimension_numbers = #tpu.dot_dimension_numbers<[1], [0], [0], [1], [0, 0, 1, 1], [], []>} : vector<32x256xbf16>, vector<256x256xbf16>, vector<32x256xf32> -> vector<32x256xf32>
    %c3_32 = arith.constant 3 : index
    %c0_33 = arith.constant 0 : index
    %49 = vector.load %arg4[%c3_32, %c0_33] : memref<4x256xf32, #tpu.memory_space<vmem>>, vector<1x256xf32>
    %50 = vector.broadcast %49 : vector<1x256xf32> to vector<32x256xf32>
    %51 = arith.addf %48, %50 : vector<32x256xf32>
    %cst_34 = arith.constant 0.000000e+00 : f32
    %52 = vector.broadcast %cst_34 : f32 to vector<32x256xf32>
    %53 = arith.maximumf %51, %52 : vector<32x256xf32>
    %54 = vector.shape_cast %53 : vector<32x256xf32> to vector<4x8x256xf32>
    %c0_35 = arith.constant 0 : index
    %c0_36 = arith.constant 0 : index
    %c0_37 = arith.constant 0 : index
    %c0_38 = arith.constant 0 : index
    %55 = vector.load %arg5[%c0_35, %c0_36, %c0_37, %c0_38] : memref<1x4x8x1xf32, #tpu.memory_space<vmem>>, vector<1x4x8x1xf32>
    %56 = vector.shape_cast %55 : vector<1x4x8x1xf32> to vector<4x8x1xf32>
    %57 = vector.broadcast %56 : vector<4x8x1xf32> to vector<4x8x256xf32>
    %58 = arith.mulf %54, %57 : vector<4x8x256xf32>
    %cst_39 = arith.constant dense<0xFF800000> : vector<4x256xf32>
    %59 = vector.multi_reduction <maximumf>, %58, %cst_39 [1] : vector<4x8x256xf32> to vector<4x256xf32>
    %c0_40 = arith.constant 0 : index
    %c0_41 = arith.constant 0 : index
    %c0_42 = arith.constant 0 : index
    %60 = vector.load %arg6[%c0_40, %c0_41, %c0_42] : memref<1x4x256xf32, #tpu.memory_space<vmem>>, vector<1x4x256xf32>
    %61 = vector.shape_cast %60 : vector<1x4x256xf32> to vector<4x256xf32>
    %62 = vector.shape_cast %59 : vector<4x256xf32> to vector<1x4x256xf32>
    tpu.vector_store %arg6[%c0_40, %c0_41, %c0_42], %62 {strides = array<i32>} : memref<1x4x256xf32, #tpu.memory_space<vmem>>, vector<1x4x256xf32>,
    return
  }
  func.func @transform_0(%arg0: i32) -> (i32, i32, i32, i32) {
    %c0_i32 = arith.constant 0 : i32
    %c0_i32_0 = arith.constant 0 : i32
    %c0_i32_1 = arith.constant 0 : i32
    %c0_i32_2 = arith.constant 0 : i32
    return %arg0, %c0_i32, %c0_i32_0, %c0_i32_1 : i32, i32, i32, i32
  }
  func.func @transform_1(%arg0: i32) -> (i32, i32, i32, i32) {
    %c0_i32 = arith.constant 0 : i32
    %c0_i32_0 = arith.constant 0 : i32
    %c0_i32_1 = arith.constant 0 : i32
    %c0_i32_2 = arith.constant 0 : i32
    return %arg0, %c0_i32, %c0_i32_0, %c0_i32_1 : i32, i32, i32, i32
  }
  func.func @transform_2(%arg0: i32) -> (i32, i32, i32) {
    %c0_i32 = arith.constant 0 : i32
    %c0_i32_0 = arith.constant 0 : i32
    %c0_i32_1 = arith.constant 0 : i32
    %c0_i32_2 = arith.constant 0 : i32
    return %c0_i32, %c0_i32_0, %c0_i32_1 : i32, i32, i32
  }
  func.func @transform_3(%arg0: i32) -> (i32, i32) {
    %c0_i32 = arith.constant 0 : i32
    %c0_i32_0 = arith.constant 0 : i32
    %c0_i32_1 = arith.constant 0 : i32
    return %c0_i32, %c0_i32_0 : i32, i32
  }
  func.func @transform_4(%arg0: i32) -> (i32, i32, i32, i32) {
    %c0_i32 = arith.constant 0 : i32
    %c0_i32_0 = arith.constant 0 : i32
    %c0_i32_1 = arith.constant 0 : i32
    %c0_i32_2 = arith.constant 0 : i32
    return %arg0, %c0_i32, %c0_i32_0, %c0_i32_1 : i32, i32, i32, i32
  }
  func.func @transform_5(%arg0: i32) -> (i32, i32, i32) {
    %c0_i32 = arith.constant 0 : i32
    %c0_i32_0 = arith.constant 0 : i32
    %c0_i32_1 = arith.constant 0 : i32
    return %arg0, %c0_i32, %c0_i32_0 : i32, i32, i32
  }
}

</mosaic_0001>

<bundles_post_ra>
// kernel: tpu_custom_call.1
= control target key start
LH: loop header
LB: loop body
LE: loop exit
PB: predicated region body
PF: predicated region fallthrough
CT: control target
= control target key end

     0   :  { %10 = vsyncpa [#allocation3], 0  ;;  %s2980_s0 = inlined_call_operand.vmem [shape: bf16[2,4,8,8], index: 0, kind: input, shape index: {}]   ;;  %s2981_s1 = inlined_call_operand.vmem [shape: bf16[2,4,8,8], index: 1, kind: input, shape index: {}]   ;;  %s2982_s2 = inlined_call_operand.hbm [shape: bf16[4,256,256], index: 2, kind: input, shape index: {}]   ;;  %s2983_s3 = inlined_call_operand.vmem [shape: f32[4,256], index: 3, kind: input, shape index: {}]   ;;  %s2984_s4 = inlined_call_operand.vmem [shape: f32[2,4,8,1], index: 4, kind: input, shape index: {}]   ;;  %s2985_s5 = inlined_call_operand.hbm [shape: f32[2,4,256], index: 5, kind: output, shape index: {}]  }
   0x1   :  { %11 = vsyncpa [#allocation4], 0 }
   0x2   :  { %13 = vsyncpa [#allocation4 + $0x1], 0  ;;  %s2709_s18 = smov 0   ;;  %s2711_s19 = smov 0  }
   0x3   :  { %s2713_s20 = smov 0   ;;  %s2715_s21 = smov 0  }
   0x4 LB: > { %s2730_s22 = sadd.s32 4294967295, %s2670_s21   ;;  %s2186_s23 = sadd.s32 4294967294, %s2670_s21   ;;  %s2670_s21 = sphi %s2715_s21, %s3001_s21   ;;  %s2666_s20 = sphi %s2713_s20, %s3000_s20   ;;  %s2662_s19 = sphi %s2711_s19, %s2999_s19   ;;  %s2658_s18 = sphi %s2709_s18, %s2998_s18  }
   0x5   : > { %s2734_s24 = sadd.s32 1, %s2670_s21   ;;  %s146_s25 = sadd.s32 1, %s2666_s20 }
   0x6   : > { %s143_s26 = ssub.s32 %s2670_s21, %s2734_s24  ;;  %p156_p0 = scmp.ne.s32.totalorder %s2666_s20, %s2662_s19 }
   0x7   : > { %p144_p1 = scmp.eq.s32.totalorder %s143_s26, 0  ;;  %p157_p2 = scmp.eq.s32.totalorder %s2730_s22, 1 }
   0x8   : > { %p162_p3 = scmp.ne.s32.totalorder %s2662_s19, %s2658_s18  ;;  %p163_p4 = scmp.eq.s32.totalorder %s2186_s23, 1 }
   0x9   : > { %s2745_s27 = scalar_select %p144_p1, %s2666_s20, %s146_s25  }
   0xa   : > { %p2747_p5 = por %p157_p2, %p156_p0  ;;  %p2751_p6 = por %p163_p4, %p162_p3 }
   0xb   : > { %p2187_p7 = scmp.ge.s32.totalorder %s2670_s21, 1  ;;  %p170_p8 = scmp.lt.s32.totalorder %s2670_s21, 3 }
   0xc   : > { %s2989_s28 = scalar_select %p2747_p5, 1, 0 }
   0xd   : > { %s2990_s29 = scalar_select %p2751_p6, 1, 0 }
   0xe   : > { %p2986_p9 = scmp.eq.s32.totalorder %s2730_s22, 0  ;;  %p2758_p10 = pnand %p2187_p7, %p170_p8 }
   0xf   : > { %s2672_s6 = smov [#allocation2]   ;;  %s2576_s11 = scalar_lea.hbm %s2982_s2, 16384 }
  0x10   : > { %s2991_s30 = scalar_select %p2758_p10, 1, 0 }
  0x11   : > { %s182_s7 = sshll.u32 %s2672_s6, 4  ;;  %p2378_p11 = pneg %p2758_p10  ;;  %s183_s7 = int_to_ptr.vmem [resolvable:$true] %s182_s7 }
  0x12   : > { %p2577_p13 = scmp.ne.s32.totalorder %s2982_s2, %s2576_s11  ;;  %p2583_p3 = scmp.lt.u32.totalorder %s2576_s11, %s2982_s2 }
  0x13   : > { %p2766_p12 = pnand %p2986_p9, %p2378_p11 }
  0x15   : > { %p2578_p0 = pneg %p2766_p12 }
  0x17   : > { %p2579_p1 = pnand %p2578_p0, %p2577_p13 }
  0x19   : > { %p2580_p2 = pneg %p2579_p1 }
  0x1b   : > { %p2585_p4 = pnand %p2583_p3, %p2580_p2 }
  0x1d   : > { %2588 = shalt.err (!%p2585_p4)
}
  0x1e   : > { %s2589_s16 = scalar_lea.vmem %s183_s7, 16384  ;;  %p2597_p9 = scmp.lt.s32.totalorder %s183_s7, %s183_s7 }
  0x1f   : > { %p2590_p7 = scmp.ne.s32.totalorder %s183_s7, %s2589_s16  ;;  %p2598_p6 = scmp.lt.s32.totalorder %s2589_s16, %s2589_s16 }
  0x21   : > { %p2592_p8 = pnand %p2590_p7, %p2578_p0  ;;  %p2599_p5 = por %p2598_p6, %p2597_p9 }
  0x23   : > { %p2593_p11 = pneg %p2592_p8 }
  0x25   : > { %p2600_p10 = pnand %p2599_p5, %p2593_p11 }
  0x27   : > { %2603 = shalt.err (!%p2600_p10)
}
  0x28   : > { %s2673_s17 = smov 128   ;;  %s2674_s23 = smov 8  }
  0x29   : > { %2381 = dma.hbm_to_vmem [thread:$0]  (!%p2766_p12), %s2982_s2, 16384, %s183_s7, [#allocation3], %s2673_s17, %s2673_s17, %s2674_s23  }
  0x2a   : > { %p2993_p13 = scmp.ne.s32.totalorder %s2991_s30, 0 }
  0x2b   : > { %p2994_p1 = scmp.eq.s32.totalorder (!%p2993_p13), %s2730_s22, 0 }
  0x2c   : > { %225 = sbr.rel (%p2993_p13) target bundleno = 1895 (0x767), region = 40 }
  0x33   : > { %2649 = dma.done.wait (%p2994_p1), [#allocation3], 16384   ;;  %p2995_p0 = pmov %p2994_p1 }
  0x34   : > { %p263_p5 = scmp.lt.s32.totalorder %s2730_s22, 1  ;;  %v2675_v0 = vmov 0.0   ;;  %vm2676_vm0 = vmmov 0   ;;  %vm291_vm1 = vcmask 1043456   ;;  %vm287_vm2 = vcmask 64512   ;;  %v475_v13 = vld [vmem:[#allocation2] sm:$0xff] }
  0x35   : > { %2651 = vsyncadd (%p2995_p0), [#allocation3], 4294950912  ;;  %2348 = vmatprep.subr.bf16.mxu0 %v2675_v0  ;;  %2350 = vmatprep.mubr.msk.bf16.mxu0 %vm2676_vm0, %v2675_v0  ;;  %v2204_v14 = vcombine.high %v475_v13, %v475_v13  ;;  %v2203_v15 = vcombine.low %v475_v13, %v475_v13  ;;  %v2677_v17 = vmov 0   ;;  %v478_v36 = vlaneseq  ;;  %v476_v39 = vld [vmem:[%s2983_s3] ss:$4 sm:$0x3] }
  0x36   : > { %s2795_s6 = scalar_select %p263_p5, %s2730_s22, 1  ;;  %753 = vmatprep.mubr.bf16.mxu1 %v2677_v17  ;;  %2427 = vset.pattern.permute.xlu0 %v2677_v17  ;;  %vm2060_vm3 = vcmask 1041409   ;;  %vm2062_vm4 = vcmask 1045509   ;;  %vm2065_vm5 = vcmask 1042434   ;;  %vm2067_vm6 = vcmask 1046534  }
  0x37   : > { %v500_v16 = vsel %vm291_vm1, %v2203_v15, 0  ;;  %2428 = vset.pattern.permute.xlu1 %v2677_v17  ;;  %v479_v37 = vshrl.u32 %v478_v36, 7  ;;  %v2433_v15 = vld [vmem:[#allocation2 + $0x104] ss:$8 sps:$4 sm:$0xff]   ;;  %vm2070_vm7 = vcmask 1043459   ;;  %s2339_s11 = sshll.u32 %s2730_s22, 7 }
  0x38   : > { %s2336_s7 = sshll.u32 %s2795_s6, 4  ;;  %v2457_v36 = vld [vmem:[#allocation2 + $0x184] ss:$8 sps:$4 sm:$0xff]   ;;  %s2338_s25 = sshll.u32 %s2795_s6, 5  ;;  %vm2072_vm8 = vcmask 1047559  }
  0x39   : > { %s272_s9 = scalar_lea.vmem %s2981_s1, %s2336_s7  ;;  %s2804_s12 = scalar_lea.vmem %s2980_s0, %s2336_s7  ;;  %v2843_v38 = vsub.s32 0, %v479_v37  ;;  %v2848_v40 = vsub.s32 1, %v479_v37  ;;  %v2455_v37 = vld [vmem:[#allocation2 + $0x180] ss:$8 sps:$4 sm:$0xff]  }
  0x3a   : > { %v283_v1 = vld [vmem:[%s272_s9] sm:$0xf]  ;;  %v284_v2 = vld [vmem:[%s272_s9 + $0x4] sm:$0xf]  ;;  %v285_v6 = vld [vmem:[%s272_s9 + $0x8] sm:$0xf]  ;;  %s277_s30 = scalar_lea.vmem %s2984_s4, %s2338_s25  ;;  %s2936_s16 = scalar_lea.hbm %s2985_s5, %s2339_s11 }
  0x3b   : > { %v293_v3 = vsel %vm291_vm1, %v283_v1, 0  ;;  %v2808_v4 = vld [vmem:[%s2804_s12] sm:$0xf]  ;;  %v339_v5 = vsel %vm291_vm1, %v284_v2, 0  ;;  %v2815_v7 = vld [vmem:[%s2804_s12 + $0x4] sm:$0xf]  ;;  %v481_v41 = vrot.slane %v476_v39, %v2843_v38  ;;  %v485_v42 = vrot.slane %v476_v39, %v2848_v40 }
  0x3c   : > { %2349 = vmatpush3.bf16.msra.mxu0 %v293_v3  ;;  %v385_v8 = vsel %vm291_vm1, %v285_v6, 0  ;;  %v286_v9 = vld [vmem:[%s272_s9 + $0xc] sm:$0xf]  ;;  %v2822_v10 = vld [vmem:[%s2804_s12 + $0x8] sm:$0xf]  ;;  %s260_s9 = sand.u32 1, %s2662_s19  }
  0x3d   : > { %2354 = vmatprep.subr.bf16.mxu0 %v2675_v0  ;;  %v431_v11 = vsel %vm291_vm1, %v286_v9, 0  ;;  %v2829_v12 = vld [vmem:[%s2804_s12 + $0xc] sm:$0xf]  ;;  %v2460_v39 = vld [vmem:[#allocation2 + $0x194] ss:$8 sps:$4 sm:$0xff]   ;;  %s2192_s10 = sshll.u32 %s260_s9, 3 }
  0x3e   : > { %s2077_s22 = scalar_lea.sflag [#allocation4], %s260_s9  ;;  %p2996_p9 = scmp.ne.s32.totalorder %s2989_s28, 0 }
  0x3f   : > { %2351 = vmatmul.mubr.msk.bf16.vlgmr.msra.gmra.mrb[0].mxu0 %vm287_vm2, %v2808_v4  ;;  %s2678_s23 = smov [#allocation5]  }
  0x40   : > { %2355 = vmatpush3.bf16.msra.mxu0 %v339_v5  ;;  %2356 = vmatprep.mubr.msk.bf16.mxu0 %vm2676_vm0, %v2675_v0  ;;  %s2608_s25 = sshll.u32 %s2678_s23, 4  ;;  %s2609_s25 = int_to_ptr.vmem [resolvable:$false] %s2608_s25 }
  0x41   : > { %2360 = vmatprep.subr.bf16.mxu0 %v2675_v0  ;;  %s2610_s26 = scalar_lea.vmem %s2609_s25, 256 }
  0x47   : > { %2357 = vmatmul.mubr.msk.bf16.vlgmr.msra.gmra.mrb[4].mxu0 %vm287_vm2, %v2815_v7 }
  0x48   : > { %2361 = vmatpush3.bf16.msra.mxu0 %v385_v8  ;;  %2362 = vmatprep.mubr.msk.bf16.mxu0 %vm2676_vm0, %v2675_v0 }
  0x49   : > { %2366 = vmatprep.subr.bf16.mxu0 %v2675_v0 }
  0x4f   : > { %2363 = vmatmul.mubr.msk.bf16.vlgmr.msra.gmra.mrb[8].mxu0 %vm287_vm2, %v2822_v10 }
  0x50   : > { %2367 = vmatpush3.bf16.msra.mxu0 %v431_v11  ;;  %2368 = vmatprep.mubr.msk.bf16.mxu0 %vm2676_vm0, %v2675_v0 }
  0x51   : > { %2205 = vmatprep.subr.msk.bf16.mxu0 %vm291_vm1, %v2204_v14 }
  0x57   : > { %2369 = vmatmul.mubr.msk.bf16.vlgmr.msra.gmra.mrb[12].mxu0 %vm287_vm2, %v2829_v12 }
  0x58   : > { %506 = vmatpush1.bf16.msra.mxu0 %v500_v16  ;;  %537 = vmatprep.mubr.bf16.mxu0 %v2677_v17 }
 0x112   : > { %v329_v18 = vpop.f32.mrb[0].mxu0 }
 0x113   : > { %v2352_v19 = vpop.f32.mrb[1].mxu0 }
 0x114   : > { %v332_v20 = vpop.f32.mrb[2].mxu0 }
 0x115   : > { %v2353_v21 = vpop.f32.mrb[3].mxu0 }
 0x116   : > { %v2431_v21 = vld [vmem:[#allocation2 + $0x100] ss:$8 sps:$4 sm:$0xff]  }
 0x11a   : > { %v375_v22 = vpop.f32.mrb[4].mxu0 }
 0x11b   : > { %v473_v23 = vpack.c.bf16 %v375_v22, %v329_v18  ;;  %v2358_v24 = vpop.f32.mrb[5].mxu0  ;;  %v2436_v22 = vld [vmem:[#allocation2 + $0x114] ss:$8 sps:$4 sm:$0xff]  }
 0x11c   : > { %v378_v25 = vpop.f32.mrb[6].mxu0  ;;  %v2439_v24 = vld [vmem:[#allocation2 + $0x124] ss:$8 sps:$4 sm:$0xff]  }
 0x11d   : > { %v2359_v26 = vpop.f32.mrb[7].mxu0  ;;  %2206 = vmatmul.mubr.msk.bf16.vlgmr.msra.gmra.mrb[16].mxu0 %vm287_vm2, %v473_v23  ;;  %v2434_v23 = vld [vmem:[#allocation2 + $0x110] ss:$8 sps:$4 sm:$0xff]   ;;  %v2437_v25 = vld [vmem:[#allocation2 + $0x120] ss:$8 sps:$4 sm:$0xff]  }
 0x11e   : > { %547 = vmatprep.mubr.bf16.mxu0 %v2677_v17  ;;  %v2442_v26 = vld [vmem:[#allocation2 + $0x134] ss:$8 sps:$4 sm:$0xff]  }
 0x122   : > { %v421_v27 = vpop.f32.mrb[8].mxu0 }
 0x123   : > { %v2364_v28 = vpop.f32.mrb[9].mxu0 }
 0x124   : > { %v424_v29 = vpop.f32.mrb[10].mxu0  ;;  %v2445_v28 = vld [vmem:[#allocation2 + $0x144] ss:$8 sps:$4 sm:$0xff]  }
 0x125   : > { %v2365_v30 = vpop.f32.mrb[11].mxu0  ;;  %v2443_v29 = vld [vmem:[#allocation2 + $0x140] ss:$8 sps:$4 sm:$0xff]  }
 0x126   : > { %v2448_v30 = vld [vmem:[#allocation2 + $0x154] ss:$8 sps:$4 sm:$0xff]  }
 0x12a   : > { %v467_v31 = vpop.f32.mrb[12].mxu0 }
 0x12b   : > { %v474_v32 = vpack.c.bf16 %v467_v31, %v421_v27  ;;  %v2370_v33 = vpop.f32.mrb[13].mxu0  ;;  %v2440_v27 = vld [vmem:[#allocation2 + $0x130] ss:$8 sps:$4 sm:$0xff]  }
 0x12c   : > { %v470_v34 = vpop.f32.mrb[14].mxu0  ;;  %v2446_v31 = vld [vmem:[#allocation2 + $0x150] ss:$8 sps:$4 sm:$0xff]   ;;  %v2449_v33 = vld [vmem:[#allocation2 + $0x160] ss:$8 sps:$4 sm:$0xff]  }
 0x12d   : > { %2207 = vmatmul.mubr.msk.bf16.gmra.mrb[20].mxu0 %vm287_vm2, %v474_v32  ;;  %v2371_v35 = vpop.f32.mrb[15].mxu0  ;;  %v2451_v32 = vld [vmem:[#allocation2 + $0x164] ss:$8 sps:$4 sm:$0xff]   ;;  %v2454_v34 = vld [vmem:[#allocation2 + $0x174] ss:$8 sps:$4 sm:$0xff]  }
 0x12e   : > { %612 = vmatprep.mubr.bf16.mxu0 %v2677_v17  ;;  %v2452_v35 = vld [vmem:[#allocation2 + $0x170] ss:$8 sps:$4 sm:$0xff]  }
 0x1f0   : > { %v539_v43 = vpop.f32.mrb[16].mxu0 }
 0x1f1   : > { %v540_v44 = vadd.f32 %v539_v43, %v481_v41  ;;  %v541_v45 = vpop.f32.mrb[17].mxu0  ;;  %v2461_v43 = vld [vmem:[#allocation2 + $0x1a0] ss:$8 sps:$4 sm:$0xff]  }
 0x1f2   : > { %v542_v46 = vadd.f32 %v541_v45, %v485_v42  ;;  %v543_v47 = vpop.f32.mrb[18].mxu0  ;;  %v2464_v45 = vld [vmem:[#allocation2 + $0x1b0] ss:$8 sps:$4 sm:$0xff]  }
 0x1f3   : > { %v558_v48 = vmax.f32 %v540_v44, 0.0  ;;  %v544_v49 = vadd.f32 %v543_v47, %v481_v41  ;;  %v545_v50 = vpop.f32.mrb[19].mxu0  ;;  %v2466_v44 = vld [vmem:[#allocation2 + $0x1b4] ss:$8 sps:$4 sm:$0xff]   ;;  %v2467_v47 = vld [vmem:[#allocation2 + $0x1c0] ss:$8 sps:$4 sm:$0xff]  }
 0x1f4   : > { %v559_v51 = vmax.f32 %v542_v46, 0.0  ;;  %v546_v52 = vadd.f32 %v545_v50, %v485_v42  ;;  %v2469_v46 = vld [vmem:[#allocation2 + $0x1c4] ss:$8 sps:$4 sm:$0xff]   ;;  %v2473_v50 = vld [vmem:[#allocation2 + $0x1e0] ss:$8 sps:$4 sm:$0xff]  }
 0x1f5   : > { %v566_v53 = vpack.c.bf16 %v558_v48, %v558_v48  ;;  %v560_v54 = vmax.f32 %v544_v49, 0.0  ;;  %v2472_v48 = vld [vmem:[#allocation2 + $0x1d4] ss:$8 sps:$4 sm:$0xff]   ;;  %v2470_v49 = vld [vmem:[#allocation2 + $0x1d0] ss:$8 sps:$4 sm:$0xff]  }
 0x1f6   : > { %v567_v55 = vpack.c.bf16 %v559_v51, %v559_v51  ;;  %v561_v56 = vmax.f32 %v546_v52, 0.0  ;;  %v2475_v51 = vld [vmem:[#allocation2 + $0x1e4] ss:$8 sps:$4 sm:$0xff]   ;;  %v2478_v52 = vld [vmem:[#allocation2 + $0x1f4] ss:$8 sps:$4 sm:$0xff]  }
 0x1f7   : > { %v575_v57 = vsel %vm291_vm1, %v566_v53, 0  ;;  %v568_v58 = vpack.c.bf16 %v560_v54, %v560_v54  ;;  %v2476_v53 = vld [vmem:[#allocation2 + $0x1f0] ss:$8 sps:$4 sm:$0xff]  }
 0x1f8   : > { %v569_v59 = vpack.c.bf16 %v561_v56, %v561_v56  ;;  %2208 = vmatprep.subr.msk.bf16.mxu0 %vm291_vm1, %v567_v55 }
 0x1f9   : > { %581 = vmatpush1.bf16.msra.mxu0 %v575_v57  ;;  %v622_v60 = vsel %vm291_vm1, %v568_v58, 0 }
 0x1fa   : > { %2210 = vmatprep.subr.msk.bf16.mxu0 %vm291_vm1, %v569_v59 }
 0x1fc   : > { %2209 = vmatmul.mubr.msk.bf16.vlgmr.msra.gmra.mrb[24].mxu0 %vm287_vm2, %v2808_v4 }
 0x1fd   : > { %628 = vmatpush1.bf16.msra.mxu0 %v622_v60  ;;  %659 = vmatprep.mubr.bf16.mxu0 %v2677_v17 }
 0x200   : > { %v549_v61 = vpop.f32.mrb[20].mxu0 }
 0x201   : > { %v550_v62 = vadd.f32 %v549_v61, %v481_v41  ;;  %v551_v63 = vpop.f32.mrb[21].mxu0 }
 0x202   : > { %v552_v0 = vadd.f32 %v551_v63, %v485_v42  ;;  %v553_v1 = vpop.f32.mrb[22].mxu0 }
 0x203   : > { %v562_v2 = vmax.f32 %v550_v62, 0.0  ;;  %v554_v3 = vadd.f32 %v553_v1, %v481_v41  ;;  %v555_v5 = vpop.f32.mrb[23].mxu0  ;;  %v2458_v41 = vld [vmem:[#allocation2 + $0x190] ss:$8 sps:$4 sm:$0xff]  }
 0x204   : > { %v563_v6 = vmax.f32 %v552_v0, 0.0  ;;  %2211 = vmatmul.mubr.msk.bf16.vlgmr.msra.gmra.mrb[28].mxu0 %vm287_vm2, %v2815_v7  ;;  %v556_v8 = vadd.f32 %v555_v5, %v485_v42  ;;  %v2463_v42 = vld [vmem:[#allocation2 + $0x1a4] ss:$8 sps:$4 sm:$0xff]  }
 0x205   : > { %v570_v9 = vpack.c.bf16 %v562_v2, %v562_v2  ;;  %v564_v11 = vmax.f32 %v554_v3, 0.0  ;;  %706 = vmatprep.mubr.bf16.mxu0 %v2677_v17 }
 0x206   : > { %v571_v13 = vpack.c.bf16 %v563_v6, %v563_v6  ;;  %v565_v14 = vmax.f32 %v556_v8, 0.0 }
 0x207   : > { %v572_v16 = vpack.c.bf16 %v564_v11, %v564_v11  ;;  %v669_v18 = vsel %vm291_vm1, %v570_v9, 0 }
 0x208   : > { %2212 = vmatprep.subr.msk.bf16.mxu0 %vm291_vm1, %v571_v13  ;;  %v573_v19 = vpack.c.bf16 %v565_v14, %v565_v14  ;;  %v2216_v14 = vld [vmem:[%s2983_s3 + $0x1] ss:$4 sm:$0x3] }
 0x209   : > { %675 = vmatpush1.bf16.msra.mxu0 %v669_v18  ;;  %v716_v20 = vsel %vm291_vm1, %v572_v16, 0  ;;  %v809_v16 = vrot.slane %v2216_v14, %v2848_v40 }
 0x20a   : > { %2214 = vmatprep.subr.msk.bf16.mxu1 %vm291_vm1, %v573_v19  ;;  %972 = vmatprep.subr.bf16.mxu0 %v2433_v15  ;;  %v805_v15 = vrot.slane %v2216_v14, %v2843_v38  ;;  %v2506_v14 = vld [vmem:[#allocation2 + $0x290] ss:$8 sps:$4 sm:$0xff]  }
 0x20b   : > { %722 = vmatpush1.bf16.msra.mxu1 %v716_v20 }
 0x20c   : > { %2213 = vmatmul.mubr.msk.bf16.vlgmr.msra.gmra.mrb[32].mxu0 %vm287_vm2, %v2822_v10 }
 0x20d   : > { %973 = vmatpush1.bf16.msra.mxu0 %v2431_v21 }
 0x20e   : > { %2215 = vmatmul.mubr.msk.bf16.vlgmr.msra.gmra.mrb[0].mxu1 %vm287_vm2, %v2829_v12  ;;  %974 = vmatprep.subr.bf16.mxu0 %v2436_v22 }
 0x20f   : > { %1079 = vmatprep.mubr.bf16.mxu1 %v2677_v17 }
 0x211   : > { %975 = vmatpush1.bf16.msra.mxu0 %v2434_v23 }
 0x212   : > { %976 = vmatprep.subr.bf16.mxu0 %v2439_v24 }
 0x215   : > { %977 = vmatpush1.bf16.msra.mxu0 %v2437_v25 }
 0x216   : > { %978 = vmatprep.subr.bf16.mxu0 %v2442_v26 }
 0x219   : > { %979 = vmatpush1.bf16.msra.mxu0 %v2440_v27 }
 0x21a   : > { %980 = vmatprep.subr.bf16.mxu0 %v2445_v28 }
 0x21d   : > { %981 = vmatpush1.bf16.msra.mxu0 %v2443_v29 }
 0x21e   : > { %982 = vmatprep.subr.bf16.mxu0 %v2448_v30 }
 0x221   : > { %983 = vmatpush1.bf16.msra.mxu0 %v2446_v31 }
 0x222   : > { %984 = vmatprep.subr.bf16.mxu0 %v2451_v32 }
 0x225   : > { %985 = vmatpush1.bf16.msra.mxu0 %v2449_v33 }
 0x226   : > { %986 = vmatprep.subr.bf16.mxu0 %v2454_v34 }
 0x229   : > { %987 = vmatpush1.bf16.msra.mxu0 %v2452_v35 }
 0x22a   : > { %988 = vmatprep.subr.bf16.mxu0 %v2457_v36 }
 0x22d   : > { %989 = vmatpush1.bf16.msra.mxu0 %v2455_v37 }
 0x22e   : > { %990 = vmatprep.subr.bf16.mxu0 %v2460_v39 }
 0x231   : > { %991 = vmatpush1.bf16.msra.mxu0 %v2458_v41 }
 0x232   : > { %992 = vmatprep.subr.bf16.mxu0 %v2463_v42 }
 0x235   : > { %993 = vmatpush1.bf16.msra.mxu0 %v2461_v43 }
 0x236   : > { %994 = vmatprep.subr.bf16.mxu0 %v2466_v44 }
 0x239   : > { %995 = vmatpush1.bf16.msra.mxu0 %v2464_v45 }
 0x23a   : > { %996 = vmatprep.subr.bf16.mxu0 %v2469_v46 }
 0x23d   : > { %997 = vmatpush1.bf16.msra.mxu0 %v2467_v47 }
 0x23e   : > { %998 = vmatprep.subr.bf16.mxu0 %v2472_v48 }
 0x241   : > { %999 = vmatpush1.bf16.msra.mxu0 %v2470_v49 }
 0x242   : > { %1000 = vmatprep.subr.bf16.mxu0 %v2475_v51 }
 0x245   : > { %1001 = vmatpush1.bf16.msra.mxu0 %v2473_v50 }
 0x246   : > { %1002 = vmatprep.subr.bf16.mxu0 %v2478_v52 }
 0x249   : > { %1003 = vmatpush1.bf16.msra.mxu0 %v2476_v53 }
 0x2cf   : > { %v614_v54 = vpop.f32.mrb[24].mxu0 }
 0x2d0   : > { %v616_v55 = vpop.f32.mrb[25].mxu0 }
 0x2d1   : > { %v618_v56 = vpop.f32.mrb[26].mxu0 }
 0x2d2   : > { %v619_v57 = vpop.f32.mrb[27].mxu0  ;;  %v2479_v56 = vld [vmem:[#allocation2 + $0x200] ss:$8 sps:$4 sm:$0xff]  }
 0x2d3   : > { %v2484_v57 = vld [vmem:[#allocation2 + $0x214] ss:$8 sps:$4 sm:$0xff]  }
 0x2d7   : > { %v661_v58 = vpop.f32.mrb[28].mxu0 }
 0x2d8   : > { %v762_v59 = vpack.c.bf16 %v661_v58, %v614_v54  ;;  %v663_v60 = vpop.f32.mrb[29].mxu0  ;;  %v2481_v54 = vld [vmem:[#allocation2 + $0x204] ss:$8 sps:$4 sm:$0xff]   ;;  %v2482_v58 = vld [vmem:[#allocation2 + $0x210] ss:$8 sps:$4 sm:$0xff]  }
 0x2d9   : > { %v763_v61 = vpack.c.bf16 %v663_v60, %v616_v55  ;;  %v665_v62 = vpop.f32.mrb[30].mxu0  ;;  %v2485_v60 = vld [vmem:[#allocation2 + $0x220] ss:$8 sps:$4 sm:$0xff]  }
 0x2da   : > { %v666_v63 = vpop.f32.mrb[31].mxu0  ;;  %v2488_v62 = vld [vmem:[#allocation2 + $0x230] ss:$8 sps:$4 sm:$0xff]  }
 0x2db   : > { %1004 = vmatprep.mubr.bf16.mxu0 %v763_v61  ;;  %v2490_v61 = vld [vmem:[#allocation2 + $0x234] ss:$8 sps:$4 sm:$0xff]   ;;  %v2493_v63 = vld [vmem:[#allocation2 + $0x244] ss:$8 sps:$4 sm:$0xff]  }
 0x2dc   : > { %1005 = vmatmul.mubr.bf16.vlgmr.msra.gmra.mrb[36].mxu0 %v762_v59  ;;  %v2487_v59 = vld [vmem:[#allocation2 + $0x224] ss:$8 sps:$4 sm:$0xff]  }
 0x2df   : > { %v708_v0 = vpop.f32.mrb[32].mxu0 }
 0x2e0   : > { %v710_v1 = vpop.f32.mrb[33].mxu0 }
 0x2e1   : > { %v755_v2 = vpop.f32.mrb[0].mxu1  ;;  %v712_v3 = vpop.f32.mrb[34].mxu0 }
 0x2e2   : > { %v764_v5 = vpack.c.bf16 %v755_v2, %v708_v0  ;;  %v757_v6 = vpop.f32.mrb[1].mxu1  ;;  %v713_v8 = vpop.f32.mrb[35].mxu0  ;;  %v2491_v0 = vld [vmem:[#allocation2 + $0x240] ss:$8 sps:$4 sm:$0xff]   ;;  %v2494_v2 = vld [vmem:[#allocation2 + $0x250] ss:$8 sps:$4 sm:$0xff]  }
 0x2e3   : > { %v765_v9 = vpack.c.bf16 %v757_v6, %v710_v1  ;;  %v759_v11 = vpop.f32.mrb[2].mxu1  ;;  %v2496_v1 = vld [vmem:[#allocation2 + $0x254] ss:$8 sps:$4 sm:$0xff]   ;;  %v2499_v3 = vld [vmem:[#allocation2 + $0x264] ss:$8 sps:$4 sm:$0xff]  }
 0x2e4   : > { %v760_v13 = vpop.f32.mrb[3].mxu1  ;;  %v2502_v6 = vld [vmem:[#allocation2 + $0x274] ss:$8 sps:$4 sm:$0xff]   ;;  %v2500_v8 = vld [vmem:[#allocation2 + $0x270] ss:$8 sps:$4 sm:$0xff]  }
 0x2e5   : > { %1014 = vmatprep.mubr.bf16.mxu0 %v765_v9  ;;  %v2505_v9 = vld [vmem:[#allocation2 + $0x284] ss:$8 sps:$4 sm:$0xff]   ;;  %v2503_v11 = vld [vmem:[#allocation2 + $0x280] ss:$8 sps:$4 sm:$0xff]   ;;  %v2508_v13 = vld [vmem:[#allocation2 + $0x294] ss:$8 sps:$4 sm:$0xff]  }
 0x2e6   : > { %1015 = vmatmul.mubr.bf16.gmra.mrb[40].mxu0 %v764_v5  ;;  %v2497_v5 = vld [vmem:[#allocation2 + $0x260] ss:$8 sps:$4 sm:$0xff]  }
 0x2e7   : > { %1546 = vmatprep.mubr.bf16.mxu0 %v2677_v17 }
 0x3af   : > { %v1006_v18 = vpop.f32.mrb[36].mxu0 }
 0x3b0   : > { %v1007_v19 = vadd.f32 %v1006_v18, %v805_v15  ;;  %v1008_v20 = vpop.f32.mrb[37].mxu0  ;;  %v2514_v18 = vld [vmem:[#allocation2 + $0x2b4] ss:$8 sps:$4 sm:$0xff]  }
 0x3b1   : > { %v1009_v21 = vadd.f32 %v1008_v20, %v809_v16  ;;  %v1010_v22 = vpop.f32.mrb[38].mxu0  ;;  %v2517_v20 = vld [vmem:[#allocation2 + $0x2c4] ss:$8 sps:$4 sm:$0xff]  }
 0x3b2   : > { %v1025_v23 = vmax.f32 %v1007_v19, 0.0  ;;  %v1011_v24 = vadd.f32 %v1010_v22, %v805_v15  ;;  %v1012_v25 = vpop.f32.mrb[39].mxu0  ;;  %v2512_v19 = vld [vmem:[#allocation2 + $0x2b0] ss:$8 sps:$4 sm:$0xff]   ;;  %v2520_v22 = vld [vmem:[#allocation2 + $0x2d4] ss:$8 sps:$4 sm:$0xff]  }
 0x3b3   : > { %v1026_v26 = vmax.f32 %v1009_v21, 0.0  ;;  %v1013_v27 = vadd.f32 %v1012_v25, %v809_v16  ;;  %v2515_v21 = vld [vmem:[#allocation2 + $0x2c0] ss:$8 sps:$4 sm:$0xff]   ;;  %v2523_v25 = vld [vmem:[#allocation2 + $0x2e4] ss:$8 sps:$4 sm:$0xff]  }
 0x3b4   : > { %v1033_v28 = vpack.c.bf16 %v1025_v23, %v1025_v23  ;;  %v1027_v29 = vmax.f32 %v1011_v24, 0.0  ;;  %v2518_v23 = vld [vmem:[#allocation2 + $0x2d0] ss:$8 sps:$4 sm:$0xff]   ;;  %v2521_v24 = vld [vmem:[#allocation2 + $0x2e0] ss:$8 sps:$4 sm:$0xff]  }
 0x3b5   : > { %v1034_v30 = vpack.c.bf16 %v1026_v26, %v1026_v26  ;;  %v1028_v31 = vmax.f32 %v1013_v27, 0.0  ;;  %v2526_v26 = vld [vmem:[#allocation2 + $0x2f4] ss:$8 sps:$4 sm:$0xff]   ;;  %v2524_v27 = vld [vmem:[#allocation2 + $0x2f0] ss:$8 sps:$4 sm:$0xff]  }
 0x3b6   : > { %v1042_v32 = vsel %vm291_vm1, %v1033_v28, 0  ;;  %v1035_v33 = vpack.c.bf16 %v1027_v29, %v1027_v29 }
 0x3b7   : > { %v1036_v34 = vpack.c.bf16 %v1028_v31, %v1028_v31  ;;  %2249 = vmatprep.subr.msk.bf16.mxu1 %vm291_vm1, %v1034_v30 }
 0x3b8   : > { %1048 = vmatpush1.bf16.msra.mxu1 %v1042_v32  ;;  %v1089_v39 = vsel %vm291_vm1, %v1035_v33, 0 }
 0x3b9   : > { %2251 = vmatprep.subr.msk.bf16.mxu1 %vm291_vm1, %v1036_v34  ;;  %v1016_v35 = vpop.f32.mrb[40].mxu0 }
 0x3ba   : > { %v1017_v36 = vadd.f32 %v1016_v35, %v805_v15  ;;  %v1018_v37 = vpop.f32.mrb[41].mxu0 }
 0x3bb   : > { %2250 = vmatmul.mubr.msk.bf16.vlgmr.msra.gmra.mrb[4].mxu1 %vm287_vm2, %v2808_v4  ;;  %v1019_v41 = vadd.f32 %v1018_v37, %v809_v16  ;;  %v1020_v42 = vpop.f32.mrb[42].mxu0 }
 0x3bc   : > { %1095 = vmatpush1.bf16.msra.mxu1 %v1089_v39  ;;  %v1029_v43 = vmax.f32 %v1017_v36, 0.0  ;;  %1126 = vmatprep.mubr.bf16.mxu1 %v2677_v17  ;;  %v1022_v44 = vpop.f32.mrb[43].mxu0  ;;  %v1021_v49 = vadd.f32 %v1020_v42, %v805_v15  ;;  %v2511_v15 = vld [vmem:[#allocation2 + $0x2a4] ss:$8 sps:$4 sm:$0xff]  }
 0x3bd   : > { %v1030_v45 = vmax.f32 %v1019_v41, 0.0  ;;  %v1023_v46 = vadd.f32 %v1022_v44, %v809_v16  ;;  %v2509_v16 = vld [vmem:[#allocation2 + $0x2a0] ss:$8 sps:$4 sm:$0xff]  }
 0x3be   : > { %v1037_v47 = vpack.c.bf16 %v1029_v43, %v1029_v43  ;;  %v1031_v52 = vmax.f32 %v1021_v49, 0.0 }
 0x3bf   : > { %v1038_v48 = vpack.c.bf16 %v1030_v45, %v1030_v45  ;;  %v1032_v50 = vmax.f32 %v1023_v46, 0.0 }
 0x3c0   : > { %v1136_v4 = vsel %vm291_vm1, %v1037_v47, 0  ;;  %v1039_v53 = vpack.c.bf16 %v1031_v52, %v1031_v52  ;;  %v2530_v52 = vld [vmem:[#allocation2 + $0x310] ss:$8 sps:$4 sm:$0xff]  }
 0x3c1   : > { %v1040_v51 = vpack.c.bf16 %v1032_v50, %v1032_v50  ;;  %2253 = vmatprep.subr.msk.bf16.mxu1 %vm291_vm1, %v1038_v48  ;;  %v2527_v50 = vld [vmem:[#allocation2 + $0x300] ss:$8 sps:$4 sm:$0xff]  }
 0x3c2   : > { %v1183_v55 = vsel %vm291_vm1, %v1039_v53, 0  ;;  %v2535_v53 = vld [vmem:[#allocation2 + $0x324] ss:$8 sps:$4 sm:$0xff]  }
 0x3c3   : > { %2252 = vmatmul.mubr.msk.bf16.vlgmr.msra.gmra.mrb[8].mxu1 %vm287_vm2, %v2815_v7 }
 0x3c4   : > { %1142 = vmatpush1.bf16.msra.mxu1 %v1136_v4  ;;  %1173 = vmatprep.mubr.bf16.mxu1 %v2677_v17  ;;  %v2532_v4 = vld [vmem:[#allocation2 + $0x314] ss:$8 sps:$4 sm:$0xff]  }
 0x3c5   : > { %2255 = vmatprep.subr.msk.bf16.mxu1 %vm291_vm1, %v1040_v51  ;;  %v2529_v51 = vld [vmem:[#allocation2 + $0x304] ss:$8 sps:$4 sm:$0xff]  }
 0x3cb   : > { %2254 = vmatmul.mubr.msk.bf16.vlgmr.msra.gmra.mrb[12].mxu1 %vm287_vm2, %v2822_v10 }
 0x3cc   : > { %1189 = vmatpush1.bf16.msra.mxu1 %v1183_v55  ;;  %1220 = vmatprep.mubr.bf16.mxu1 %v2677_v17  ;;  %v2538_v55 = vld [vmem:[#allocation2 + $0x334] ss:$8 sps:$4 sm:$0xff]  }
 0x3cd   : > { %1439 = vmatprep.subr.bf16.mxu1 %v2481_v54  ;;  %v2533_v54 = vld [vmem:[#allocation2 + $0x320] ss:$8 sps:$4 sm:$0xff]  }
 0x3d3   : > { %2256 = vmatmul.mubr.msk.bf16.vlgmr.msra.gmra.mrb[16].mxu1 %vm287_vm2, %v2829_v12 }
 0x3d4   : > { %1440 = vmatpush1.bf16.msra.mxu1 %v2479_v56  ;;  %v2536_v56 = vld [vmem:[#allocation2 + $0x330] ss:$8 sps:$4 sm:$0xff]  }
 0x3d5   : > { %1441 = vmatprep.subr.bf16.mxu1 %v2484_v57  ;;  %v2541_v57 = vld [vmem:[#allocation2 + $0x344] ss:$8 sps:$4 sm:$0xff]  }
 0x3d8   : > { %1442 = vmatpush1.bf16.msra.mxu1 %v2482_v58  ;;  %v2539_v58 = vld [vmem:[#allocation2 + $0x340] ss:$8 sps:$4 sm:$0xff]  }
 0x3d9   : > { %1443 = vmatprep.subr.bf16.mxu1 %v2487_v59  ;;  %v2544_v59 = vld [vmem:[#allocation2 + $0x354] ss:$8 sps:$4 sm:$0xff]  }
 0x3dc   : > { %1444 = vmatpush1.bf16.msra.mxu1 %v2485_v60  ;;  %v2542_v60 = vld [vmem:[#allocation2 + $0x350] ss:$8 sps:$4 sm:$0xff]  }
 0x3dd   : > { %1445 = vmatprep.subr.bf16.mxu1 %v2490_v61  ;;  %v2547_v61 = vld [vmem:[#allocation2 + $0x364] ss:$8 sps:$4 sm:$0xff]  }
 0x3e0   : > { %1446 = vmatpush1.bf16.msra.mxu1 %v2488_v62  ;;  %v2545_v62 = vld [vmem:[#allocation2 + $0x360] ss:$8 sps:$4 sm:$0xff]  }
 0x3e1   : > { %1447 = vmatprep.subr.bf16.mxu1 %v2493_v63  ;;  %v2550_v63 = vld [vmem:[#allocation2 + $0x374] ss:$8 sps:$4 sm:$0xff]  }
 0x3e4   : > { %1448 = vmatpush1.bf16.msra.mxu1 %v2491_v0  ;;  %v2548_v0 = vld [vmem:[#allocation2 + $0x370] ss:$8 sps:$4 sm:$0xff]  }
 0x3e5   : > { %1449 = vmatprep.subr.bf16.mxu1 %v2496_v1  ;;  %v2553_v1 = vld [vmem:[#allocation2 + $0x384] ss:$8 sps:$4 sm:$0xff]  }
 0x3e8   : > { %1450 = vmatpush1.bf16.msra.mxu1 %v2494_v2  ;;  %v2551_v2 = vld [vmem:[#allocation2 + $0x380] ss:$8 sps:$4 sm:$0xff]  }
 0x3e9   : > { %1451 = vmatprep.subr.bf16.mxu1 %v2499_v3  ;;  %v2556_v3 = vld [vmem:[#allocation2 + $0x394] ss:$8 sps:$4 sm:$0xff]  }
 0x3ec   : > { %1452 = vmatpush1.bf16.msra.mxu1 %v2497_v5  ;;  %v2554_v5 = vld [vmem:[#allocation2 + $0x390] ss:$8 sps:$4 sm:$0xff]  }
 0x3ed   : > { %1453 = vmatprep.subr.bf16.mxu1 %v2502_v6  ;;  %v2559_v6 = vld [vmem:[#allocation2 + $0x3a4] ss:$8 sps:$4 sm:$0xff]  }
 0x3f0   : > { %1454 = vmatpush1.bf16.msra.mxu1 %v2500_v8  ;;  %v2557_v8 = vld [vmem:[#allocation2 + $0x3a0] ss:$8 sps:$4 sm:$0xff]  }
 0x3f1   : > { %1455 = vmatprep.subr.bf16.mxu1 %v2505_v9  ;;  %v2562_v9 = vld [vmem:[#allocation2 + $0x3b4] ss:$8 sps:$4 sm:$0xff]  }
 0x3f4   : > { %1456 = vmatpush1.bf16.msra.mxu1 %v2503_v11  ;;  %v2560_v11 = vld [vmem:[#allocation2 + $0x3b0] ss:$8 sps:$4 sm:$0xff]  }
 0x3f5   : > { %1457 = vmatprep.subr.bf16.mxu1 %v2508_v13  ;;  %v2565_v13 = vld [vmem:[#allocation2 + $0x3c4] ss:$8 sps:$4 sm:$0xff]  }
 0x3f8   : > { %1458 = vmatpush1.bf16.msra.mxu1 %v2506_v14  ;;  %v2563_v14 = vld [vmem:[#allocation2 + $0x3c0] ss:$8 sps:$4 sm:$0xff]  }
 0x3f9   : > { %1459 = vmatprep.subr.bf16.mxu1 %v2511_v15  ;;  %v2568_v15 = vld [vmem:[#allocation2 + $0x3d4] ss:$8 sps:$4 sm:$0xff]  }
 0x3fc   : > { %1460 = vmatpush1.bf16.msra.mxu1 %v2509_v16  ;;  %v2566_v16 = vld [vmem:[#allocation2 + $0x3d0] ss:$8 sps:$4 sm:$0xff]  }
 0x3fd   : > { %1461 = vmatprep.subr.bf16.mxu1 %v2514_v18  ;;  %v2257_v18 = vld [vmem:[%s2983_s3 + $0x2] ss:$4 sm:$0x3] }
 0x400   : > { %1462 = vmatpush1.bf16.msra.mxu1 %v2512_v19  ;;  %v1272_v19 = vrot.slane %v2257_v18, %v2843_v38 }
 0x401   : > { %1463 = vmatprep.subr.bf16.mxu1 %v2517_v20  ;;  %v1276_v20 = vrot.slane %v2257_v18, %v2848_v40 }
 0x404   : > { %1464 = vmatpush1.bf16.msra.mxu1 %v2515_v21 }
 0x405   : > { %1465 = vmatprep.subr.bf16.mxu1 %v2520_v22 }
 0x408   : > { %1466 = vmatpush1.bf16.msra.mxu1 %v2518_v23 }
 0x409   : > { %1467 = vmatprep.subr.bf16.mxu1 %v2523_v25 }
 0x40c   : > { %1468 = vmatpush1.bf16.msra.mxu1 %v2521_v24 }
 0x40d   : > { %1469 = vmatprep.subr.bf16.mxu1 %v2526_v26 }
 0x410   : > { %1470 = vmatpush1.bf16.msra.mxu1 %v2524_v27 }
 0x411   : > { %1906 = vmatprep.subr.bf16.mxu1 %v2529_v51 }
 0x48e   : > { %v1081_v28 = vpop.f32.mrb[4].mxu1 }
 0x48f   : > { %v1083_v29 = vpop.f32.mrb[5].mxu1 }
 0x490   : > { %v1085_v30 = vpop.f32.mrb[6].mxu1 }
 0x491   : > { %v1086_v31 = vpop.f32.mrb[7].mxu1 }
 0x496   : > { %v1128_v32 = vpop.f32.mrb[8].mxu1 }
 0x497   : > { %v1229_v33 = vpack.c.bf16 %v1128_v32, %v1081_v28  ;;  %v1130_v34 = vpop.f32.mrb[9].mxu1 }
 0x498   : > { %v1230_v35 = vpack.c.bf16 %v1130_v34, %v1083_v29  ;;  %v1132_v36 = vpop.f32.mrb[10].mxu1 }
 0x499   : > { %v1133_v37 = vpop.f32.mrb[11].mxu1 }
 0x49a   : > { %1471 = vmatprep.mubr.bf16.mxu1 %v1230_v35 }
 0x49b   : > { %1472 = vmatmul.mubr.bf16.vlgmr.msra.gmra.mrb[20].mxu1 %v1229_v33 }
 0x49c   : > { %1907 = vmatpush1.bf16.msra.mxu1 %v2527_v50 }
 0x49d   : > { %1908 = vmatprep.subr.bf16.mxu1 %v2532_v4 }
 0x49e   : > { %v1175_v39 = vpop.f32.mrb[12].mxu1 }
 0x49f   : > { %v1177_v41 = vpop.f32.mrb[13].mxu1 }
 0x4a0   : > { %v1179_v42 = vpop.f32.mrb[14].mxu1  ;;  %1909 = vmatpush1.bf16.msra.mxu1 %v2530_v52 }
 0x4a1   : > { %v1180_v43 = vpop.f32.mrb[15].mxu1  ;;  %1910 = vmatprep.subr.bf16.mxu1 %v2535_v53 }
 0x4a4   : > { %1911 = vmatpush1.bf16.msra.mxu1 %v2533_v54 }
 0x4a5   : > { %1912 = vmatprep.subr.bf16.mxu1 %v2538_v55 }
 0x4a6   : > { %v1222_v44 = vpop.f32.mrb[16].mxu1 }
 0x4a7   : > { %v1231_v45 = vpack.c.bf16 %v1222_v44, %v1175_v39  ;;  %v1224_v46 = vpop.f32.mrb[17].mxu1  ;;  %v2575_v39 = vld [vmem:[%s2804_s12] sm:$0xf]  ;;  %s262_s12 = scalar_lea.vmem [#allocation5], %s2192_s10 }
 0x4a8   : > { %v1232_v47 = vpack.c.bf16 %v1224_v46, %v1177_v41  ;;  %v1226_v48 = vpop.f32.mrb[18].mxu1  ;;  %1913 = vmatpush1.bf16.msra.mxu1 %v2536_v56  ;;  %s2091_s13 = sshll.u32 %s262_s12, 4  ;;  %s2938_s13 = int_to_ptr.vmem [resolvable:$true] %s2091_s13 }
 0x4a9   : > { %v1227_v49 = vpop.f32.mrb[19].mxu1  ;;  %1914 = vmatprep.subr.bf16.mxu1 %v2541_v57  ;;  %s2604_s17 = scalar_lea.vmem %s2938_s13, 128  ;;  %p2611_p2 = scmp.lt.s32.totalorder %s2938_s13, %s2609_s25 }
 0x4aa   : > { %1481 = vmatprep.mubr.bf16.mxu1 %v1232_v47  ;;  %p2605_p6 = scmp.ne.s32.totalorder %s2938_s13, %s2604_s17  ;;  %p2612_p3 = scmp.lt.s32.totalorder %s2610_s26, %s2604_s17 }
 0x4ab   : > { %1482 = vmatmul.mubr.bf16.gmra.mrb[24].mxu1 %v1231_v45 }
 0x4ac   : > { %1915 = vmatpush1.bf16.msra.mxu1 %v2539_v58  ;;  %v2569_v58 = vld [vmem:[#allocation2 + $0x3e0] ss:$8 sps:$4 sm:$0xff]   ;;  %p2606_p10 = pnand %p2605_p6, %p2996_p9  ;;  %p2613_p4 = por %p2612_p3, %p2611_p2 }
 0x4ad   : > { %1916 = vmatprep.subr.bf16.mxu1 %v2544_v59  ;;  %v2571_v59 = vld [vmem:[#allocation2 + $0x3e4] ss:$8 sps:$4 sm:$0xff]  }
 0x4ae   : > { %p2607_p12 = pneg %p2606_p10 }
 0x4b0   : > { %1917 = vmatpush1.bf16.msra.mxu1 %v2542_v60  ;;  %v2574_v60 = vld [vmem:[#allocation2 + $0x3f4] ss:$8 sps:$4 sm:$0xff]   ;;  %p2614_p7 = pnand %p2613_p4, %p2607_p12 }
 0x4b1   : > { %1918 = vmatprep.subr.bf16.mxu1 %v2547_v61  ;;  %v2572_v61 = vld [vmem:[#allocation2 + $0x3f0] ss:$8 sps:$4 sm:$0xff]  }
 0x4b4   : > { %1919 = vmatpush1.bf16.msra.mxu1 %v2545_v62  ;;  %v1969_v62 = vld [vmem:[%s277_s30 + $0x10] sm:$0xff] }
 0x4b5   : > { %1920 = vmatprep.subr.bf16.mxu1 %v2550_v63  ;;  %1983 = vperm.xlu1 %2428, %v1969_v62   ;;  %v1970_v63 = vld [vmem:[%s277_s30 + $0x18] sm:$0xff] }
 0x4b8   : > { %1921 = vmatpush1.bf16.msra.mxu1 %v2548_v0 }
 0x4b9   : > { %1922 = vmatprep.subr.bf16.mxu1 %v2553_v1  ;;  %1988 = vperm.xlu1 %2428, %v1970_v63  }
 0x4bc   : > { %1923 = vmatpush1.bf16.msra.mxu1 %v2551_v2 }
 0x4bd   : > { %1924 = vmatprep.subr.bf16.mxu1 %v2556_v3 }
 0x4c0   : > { %1925 = vmatpush1.bf16.msra.mxu1 %v2554_v5 }
 0x4c1   : > { %1926 = vmatprep.subr.bf16.mxu1 %v2559_v6 }
 0x4c4   : > { %1927 = vmatpush1.bf16.msra.mxu1 %v2557_v8 }
 0x4c5   : > { %1928 = vmatprep.subr.bf16.mxu1 %v2562_v9 }
 0x4c8   : > { %1929 = vmatpush1.bf16.msra.mxu1 %v2560_v11 }
 0x4c9   : > { %1930 = vmatprep.subr.bf16.mxu1 %v2565_v13 }
 0x4cc   : > { %1931 = vmatpush1.bf16.msra.mxu1 %v2563_v14 }
 0x4cd   : > { %1932 = vmatprep.subr.bf16.mxu1 %v2568_v15 }
 0x4d0   : > { %1933 = vmatpush1.bf16.msra.mxu1 %v2566_v16 }
 0x4d1   : > { %1934 = vmatprep.subr.bf16.mxu1 %v2571_v59 }
 0x4d4   : > { %1935 = vmatpush1.bf16.msra.mxu1 %v2569_v58 }
 0x4d5   : > { %1936 = vmatprep.subr.bf16.mxu1 %v2574_v60 }
 0x4d8   : > { %1937 = vmatpush1.bf16.msra.mxu1 %v2572_v61 }
 0x56e   : > { %v1473_v21 = vpop.f32.mrb[20].mxu1 }
 0x56f   : > { %v1474_v22 = vadd.f32 %v1473_v21, %v1272_v19  ;;  %v1475_v23 = vpop.f32.mrb[21].mxu1 }
 0x570   : > { %v1476_v24 = vadd.f32 %v1475_v23, %v1276_v20  ;;  %v1477_v25 = vpop.f32.mrb[22].mxu1 }
 0x571   : > { %v1492_v26 = vmax.f32 %v1474_v22, 0.0  ;;  %v1478_v27 = vadd.f32 %v1477_v25, %v1272_v19  ;;  %v1479_v28 = vpop.f32.mrb[23].mxu1 }
 0x572   : > { %v1493_v29 = vmax.f32 %v1476_v24, 0.0  ;;  %v1480_v30 = vadd.f32 %v1479_v28, %v1276_v20  ;;  %v2298_v24 = vld [vmem:[%s2983_s3 + $0x3] ss:$4 sm:$0x3] }
 0x573   : > { %v1500_v31 = vpack.c.bf16 %v1492_v26, %v1492_v26  ;;  %v1494_v32 = vmax.f32 %v1478_v27, 0.0  ;;  %v1739_v26 = vrot.slane %v2298_v24, %v2843_v38  ;;  %v1743_v27 = vrot.slane %v2298_v24, %v2848_v40 }
 0x574   : > { %v1501_v33 = vpack.c.bf16 %v1493_v29, %v1493_v29  ;;  %v1495_v34 = vmax.f32 %v1480_v30, 0.0 }
 0x575   : > { %v1509_v35 = vsel %vm291_vm1, %v1500_v31, 0  ;;  %v1502_v36 = vpack.c.bf16 %v1494_v32, %v1494_v32 }
 0x576   : > { %v1503_v37 = vpack.c.bf16 %v1495_v34, %v1495_v34  ;;  %2290 = vmatprep.subr.msk.bf16.mxu0 %vm291_vm1, %v1501_v33 }
 0x577   : > { %1515 = vmatpush1.bf16.msra.mxu0 %v1509_v35  ;;  %v1556_v41 = vsel %vm291_vm1, %v1502_v36, 0 }
 0x578   : > { %2292 = vmatprep.subr.msk.bf16.mxu0 %vm291_vm1, %v1503_v37 }
 0x57a   : > { %2291 = vmatmul.mubr.msk.bf16.vlgmr.msra.gmra.mrb[44].mxu0 %vm287_vm2, %v2575_v39 }
 0x57b   : > { %1562 = vmatpush1.bf16.msra.mxu0 %v1556_v41  ;;  %1593 = vmatprep.mubr.bf16.mxu0 %v2677_v17 }
 0x57e   : > { %v1483_v42 = vpop.f32.mrb[24].mxu1 }
 0x57f   : > { %v1484_v43 = vadd.f32 %v1483_v42, %v1272_v19  ;;  %v1485_v44 = vpop.f32.mrb[25].mxu1 }
 0x580   : > { %v1486_v45 = vadd.f32 %v1485_v44, %v1276_v20  ;;  %v1487_v46 = vpop.f32.mrb[26].mxu1 }
 0x581   : > { %v1496_v47 = vmax.f32 %v1484_v43, 0.0  ;;  %v1488_v48 = vadd.f32 %v1487_v46, %v1272_v19  ;;  %v1489_v49 = vpop.f32.mrb[27].mxu1 }
 0x582   : > { %v1497_v50 = vmax.f32 %v1486_v45, 0.0  ;;  %v1490_v51 = vadd.f32 %v1489_v49, %v1276_v20  ;;  %2293 = vmatmul.mubr.msk.bf16.vlgmr.msra.gmra.mrb[48].mxu0 %vm287_vm2, %v2815_v7 }
 0x583   : > { %v1504_v4 = vpack.c.bf16 %v1496_v47, %v1496_v47  ;;  %v1498_v52 = vmax.f32 %v1488_v48, 0.0  ;;  %1640 = vmatprep.mubr.bf16.mxu0 %v2677_v17 }
 0x584   : > { %v1505_v53 = vpack.c.bf16 %v1497_v50, %v1497_v50  ;;  %v1499_v54 = vmax.f32 %v1490_v51, 0.0 }
 0x585   : > { %v1603_v55 = vsel %vm291_vm1, %v1504_v4, 0  ;;  %v1506_v56 = vpack.c.bf16 %v1498_v52, %v1498_v52 }
 0x586   : > { %v1507_v57 = vpack.c.bf16 %v1499_v54, %v1499_v54  ;;  %2294 = vmatprep.subr.msk.bf16.mxu0 %vm291_vm1, %v1505_v53 }
 0x587   : > { %1609 = vmatpush1.bf16.msra.mxu0 %v1603_v55  ;;  %v1650_v7 = vsel %vm291_vm1, %v1506_v56, 0 }
 0x588   : > { %2296 = vmatprep.subr.msk.bf16.mxu0 %vm291_vm1, %v1507_v57 }
 0x58a   : > { %2295 = vmatmul.mubr.msk.bf16.vlgmr.msra.gmra.mrb[52].mxu0 %vm287_vm2, %v2822_v10  ;;  %v1968_v10 = vld [vmem:[%s277_s30 + $0x8] sm:$0xff] }
 0x58b   : > { %1656 = vmatpush1.bf16.msra.mxu0 %v1650_v7  ;;  %1687 = vmatprep.mubr.bf16.mxu0 %v2677_v17  ;;  %v1967_v17 = vld [vmem:[%s277_s30] sm:$0xff] }
 0x58c   : > { %1978 = vperm.xlu0 %2427, %v1968_v10   ;;  %v1984_v10 = vpop.permute.xlu1 %1983 }
 0x590   : > { %1973 = vperm.xlu0 %2427, %v1967_v17  }
 0x592   : > { %2297 = vmatmul.mubr.msk.bf16.vlgmr.msra.gmra.mrb[56].mxu0 %vm287_vm2, %v2829_v12 }
 0x60b   : > { %v1979_v25 = vpop.permute.xlu0 %1978 }
 0x60f   : > { %v1974_v33 = vpop.permute.xlu0 %1973 }
 0x64d   : > { %v1548_v12 = vpop.f32.mrb[44].mxu0 }
 0x64e   : > { %v1550_v0 = vpop.f32.mrb[45].mxu0 }
 0x64f   : > { %v1552_v1 = vpop.f32.mrb[46].mxu0 }
 0x650   : > { %v1553_v2 = vpop.f32.mrb[47].mxu0 }
 0x655   : > { %v1595_v3 = vpop.f32.mrb[48].mxu0 }
 0x656   : > { %v1696_v5 = vpack.c.bf16 %v1595_v3, %v1548_v12  ;;  %v1597_v6 = vpop.f32.mrb[49].mxu0 }
 0x657   : > { %v1697_v8 = vpack.c.bf16 %v1597_v6, %v1550_v0  ;;  %v1599_v9 = vpop.f32.mrb[50].mxu0 }
 0x658   : > { %v1600_v11 = vpop.f32.mrb[51].mxu0 }
 0x659   : > { %1938 = vmatprep.mubr.bf16.mxu1 %v1697_v8 }
 0x65a   : > { %1939 = vmatmul.mubr.bf16.vlgmr.msra.gmra.mrb[28].mxu1 %v1696_v5 }
 0x65d   : > { %v1642_v13 = vpop.f32.mrb[52].mxu0 }
 0x65e   : > { %v1644_v14 = vpop.f32.mrb[53].mxu0 }
 0x65f   : > { %v1646_v15 = vpop.f32.mrb[54].mxu0 }
 0x660   : > { %v1647_v16 = vpop.f32.mrb[55].mxu0 }
 0x665   : > { %v1689_v18 = vpop.f32.mrb[56].mxu0 }
 0x666   : > { %v1698_v19 = vpack.c.bf16 %v1689_v18, %v1642_v13  ;;  %v1691_v20 = vpop.f32.mrb[57].mxu0 }
 0x667   : > { %v1699_v21 = vpack.c.bf16 %v1691_v20, %v1644_v14  ;;  %v1693_v22 = vpop.f32.mrb[58].mxu0 }
 0x668   : > { %v1694_v23 = vpop.f32.mrb[59].mxu0  ;;  %v1989_v22 = vpop.permute.xlu1 %1988 }
 0x669   : > { %1948 = vmatprep.mubr.bf16.mxu1 %v1699_v21 }
 0x66a   : > { %1949 = vmatmul.mubr.bf16.gmra.mrb[32].mxu1 %v1698_v19 }
 0x72d   : > { %v1940_v28 = vpop.f32.mrb[28].mxu1 }
 0x72e   : > { %v1941_v29 = vadd.f32 %v1940_v28, %v1739_v26  ;;  %v1942_v30 = vpop.f32.mrb[29].mxu1 }
 0x72f   : > { %v1943_v31 = vadd.f32 %v1942_v30, %v1743_v27  ;;  %v1944_v32 = vpop.f32.mrb[30].mxu1 }
 0x730   : > { %v1959_v34 = vmax.f32 %v1941_v29, 0.0  ;;  %v1945_v35 = vadd.f32 %v1944_v32, %v1739_v26  ;;  %v1946_v36 = vpop.f32.mrb[31].mxu1 }
 0x731   : > { %v1960_v37 = vmax.f32 %v1943_v31, 0.0  ;;  %v1947_v39 = vadd.f32 %v1946_v36, %v1743_v27 }
 0x732   : > { %v1961_v41 = vmax.f32 %v1945_v35, 0.0  ;;  %v1991_v42 = vmul.f32 %v1974_v33, %v1959_v34 }
 0x733   : > { %v1962_v43 = vmax.f32 %v1947_v39, 0.0  ;;  %v1992_v44 = vmul.f32 %v1974_v33, %v1960_v37 }
 0x734   : > { %v1993_v45 = vmul.f32 %v1979_v25, %v1961_v41  ;;  %v1999_v46 = vrot.slane %v1991_v42, 4 }
 0x735   : > { %v1994_v38 = vmul.f32 %v1979_v25, %v1962_v43  ;;  %v2005_v47 = vrot.slane %v1992_v44, 4 }
 0x736   : > { %v2011_v40 = vrot.slane %v1993_v45, 4  ;;  %v2000_v48 = vmax.f32 %v1991_v42, %v1999_v46 }
 0x737   : > { %v2017_v49 = vrot.slane %v1994_v38, 4  ;;  %v2006_v50 = vmax.f32 %v1992_v44, %v2005_v47 }
 0x738   : > { %v2012_v51 = vmax.f32 %v1993_v45, %v2011_v40  ;;  %v2001_v4 = vrot.slane %v2000_v48, 2 }
 0x739   : > { %v2018_v52 = vmax.f32 %v1994_v38, %v2017_v49  ;;  %v2007_v53 = vrot.slane %v2006_v50, 2 }
 0x73a   : > { %v2013_v54 = vrot.slane %v2012_v51, 2  ;;  %v2002_v55 = vmax.f32 %v2000_v48, %v2001_v4 }
 0x73b   : > { %v2019_v56 = vrot.slane %v2018_v52, 2  ;;  %v2008_v57 = vmax.f32 %v2006_v50, %v2007_v53 }
 0x73c   : > { %v2014_v7 = vmax.f32 %v2012_v51, %v2013_v54  ;;  %v2003_v58 = vrot.slane %v2002_v55, 1 }
 0x73d   : > { %v2020_v59 = vmax.f32 %v2018_v52, %v2019_v56  ;;  %v2009_v60 = vrot.slane %v2008_v57, 1  ;;  %v1950_v61 = vpop.f32.mrb[32].mxu1 }
 0x73e   : > { %v2015_v62 = vrot.slane %v2014_v7, 1  ;;  %v2004_v17 = vmax.f32 %v2002_v55, %v2003_v58  ;;  %v1951_v63 = vadd.f32 %v1950_v61, %v1739_v26  ;;  %v1952_v12 = vpop.f32.mrb[33].mxu1 }
 0x73f   : > { %v2021_v0 = vrot.slane %v2020_v59, 1  ;;  %v2010_v1 = vmax.f32 %v2008_v57, %v2009_v60  ;;  %v1953_v2 = vadd.f32 %v1952_v12, %v1743_v27  ;;  %v1954_v3 = vpop.f32.mrb[34].mxu1 }
 0x740   : > { %v2016_v5 = vmax.f32 %v2014_v7, %v2015_v62  ;;  %v1963_v6 = vmax.f32 %v1951_v63, 0.0  ;;  %v1955_v8 = vadd.f32 %v1954_v3, %v1739_v26  ;;  %v1956_v9 = vpop.f32.mrb[35].mxu1 }
 0x741   : > { %v2022_v11 = vmax.f32 %v2020_v59, %v2021_v0  ;;  %v2055_v13 = vcombine.low %v2004_v17, %v2010_v1  ;;  %v1964_v14 = vmax.f32 %v1953_v2, 0.0  ;;  %v1957_v15 = vadd.f32 %v1956_v9, %v1743_v27 }
 0x742   : > { %v1995_v16 = vmul.f32 %v1984_v10, %v1963_v6  ;;  %v1965_v18 = vmax.f32 %v1955_v8, 0.0 }
 0x743   : > { %v2056_v19 = vcombine.low %v2016_v5, %v2022_v11  ;;  %v1996_v20 = vmul.f32 %v1984_v10, %v1964_v14  ;;  %v1966_v21 = vmax.f32 %v1957_v15, 0.0 }
 0x744   : > { %v2023_v23 = vrot.slane %v1995_v16, 4  ;;  %v1997_v24 = vmul.f32 %v1989_v22, %v1965_v18 }
 0x745   : > { %v2059_v25 = vrot.slane %v2056_v19, 7  ;;  %v2029_v28 = vrot.slane %v1996_v20, 4  ;;  %v1998_v29 = vmul.f32 %v1989_v22, %v1966_v21 }
 0x746   : > { %v2024_v26 = vmax.f32 %v1995_v16, %v2023_v23  ;;  %v2035_v30 = vrot.slane %v1997_v24, 4 }
 0x747   : > { %v2061_v31 = vsel %vm2060_vm3, %v2059_v25, %v2055_v13  ;;  %v2030_v32 = vmax.f32 %v1996_v20, %v2029_v28  ;;  %v2041_v33 = vrot.slane %v1998_v29, 4 }
 0x748   : > { %v2063_v27 = vsel %vm2062_vm4, %v2059_v25, %v2061_v31  ;;  %v2025_v34 = vrot.slane %v2024_v26, 2  ;;  %v2036_v35 = vmax.f32 %v1997_v24, %v2035_v30 }
 0x749   : > { %v2031_v36 = vrot.slane %v2030_v32, 2  ;;  %v2042_v37 = vmax.f32 %v1998_v29, %v2041_v33 }
 0x74a   : > { %v2026_v39 = vmax.f32 %v2024_v26, %v2025_v34  ;;  %v2037_v41 = vrot.slane %v2036_v35, 2 }
 0x74b   : > { %v2032_v42 = vmax.f32 %v2030_v32, %v2031_v36  ;;  %v2043_v43 = vrot.slane %v2042_v37, 2 }
 0x74c   : > { %v2027_v44 = vrot.slane %v2026_v39, 1  ;;  %v2038_v45 = vmax.f32 %v2036_v35, %v2037_v41 }
 0x74d   : > { %v2033_v46 = vrot.slane %v2032_v42, 1  ;;  %v2044_v38 = vmax.f32 %v2042_v37, %v2043_v43 }
 0x74e   : > { %v2028_v47 = vmax.f32 %v2026_v39, %v2027_v44  ;;  %v2039_v40 = vrot.slane %v2038_v45, 1 }
 0x74f   : > { %v2034_v48 = vmax.f32 %v2032_v42, %v2033_v46  ;;  %v2045_v49 = vrot.slane %v2044_v38, 1 }
 0x750   : > { %v2040_v50 = vmax.f32 %v2038_v45, %v2039_v40 }
 0x751   : > { %v2057_v51 = vcombine.low %v2028_v47, %v2034_v48  ;;  %v2046_v4 = vmax.f32 %v2044_v38, %v2045_v49 }
 0x753   : > { %v2064_v52 = vrot.slane %v2057_v51, 6  ;;  %v2058_v53 = vcombine.low %v2040_v50, %v2046_v4 }
 0x755   : > { %v2069_v54 = vrot.slane %v2058_v53, 5  ;;  %v2066_v55 = vsel %vm2065_vm5, %v2064_v52, %v2063_v27 }
 0x756   : > { %v2068_v56 = vsel %vm2067_vm6, %v2064_v52, %v2066_v55 }
 0x757   : > { %v2071_v57 = vsel %vm2070_vm7, %v2069_v54, %v2068_v56 }
 0x758   : > { %v2073_v7 = vsel %vm2072_vm8, %v2069_v54, %v2071_v57 }
 0x759   : > { %2075 = vst [vmem:[%s262_s12] sm:$0xff] %v2073_v7 }
 0x75a   : > { %2617 = shalt.err (!%p2614_p7)
}
 0x75b   : > { %s2618_s7 = scalar_lea.hbm %s2936_s16, 128  ;;  %s2622_s8 = scalar_lea.hbm %s2985_s5, 256 }
 0x75c   : > { %p2619_p8 = scmp.ne.s32.totalorder %s2936_s16, %s2618_s7  ;;  %p2623_p1 = scmp.lt.u32.totalorder %s2936_s16, %s2985_s5 }
 0x75d   : > { %p2624_p0 = scmp.lt.u32.totalorder %s2622_s8, %s2618_s7  ;;  %p2626_p6 = scmp.lt.u32.totalorder %s2618_s7, %s2936_s16 }
 0x75e   : > { %p2620_p11 = pnand %p2619_p8, %p2996_p9 }
 0x75f   : > { %p2625_p5 = por %p2624_p0, %p2623_p1 }
 0x760   : > { %p2621_p13 = pneg %p2620_p11 }
 0x761   : > { %p2627_p10 = por %p2626_p6, %p2625_p5 }
 0x763   : > { %p2628_p12 = pnand %p2627_p10, %p2621_p13 }
 0x765   : > { %2631 = shalt.err (!%p2628_p12)
}
 0x766   : > { %2376 = dma.vmem_to_hbm [thread:$0]  (%p2996_p9), %s2938_s13, 128, %s2936_s16, %s2077_s22  }
 0x767 PF: > { %p2388_p2 = scmp.ge.s32.totalorder %s2670_s21, 2  ;;  %s2103_s11 = sand.u32 1, %s2658_s18  }
 0x768   : > { %p2997_p3 = scmp.ne.s32.totalorder %s2990_s29, 0  ;;  %s2104_s12 = scalar_lea.sflag [#allocation4], %s2103_s11 }
 0x76a   : > { %p2383_p4 = pnand %p2388_p2, %p2997_p3 }
 0x76c   : > { %2653 = dma.done.wait (!%p2383_p4), %s2104_s12, 128  }
 0x76d   : > { %2655 = vsyncadd (!%p2383_p4), %s2104_s12, 4294967168  ;;  %p16_p7 = scmp.ge.s32.totalorder %s2734_s24, 4   ;;  %s2998_s18 = smov %s2662_s19 }
 0x76e   : > { %s2999_s19 = smov %s2666_s20  ;;  %s3000_s20 = smov %s2745_s27 }
 0x76f   : > { %s3001_s21 = smov %s2734_s24  ;;  %18 = sbr.rel (!%p16_p7) target bundleno = 4 (0x4), region = 92 }
 0x776   :  { %2109 = vsyncpa [#allocation3], 1 }
 0x777   :  { %2111 = vsyncpa [#allocation3 + $0x1], 1 }
 0x778   :  { %2112 = vsyncpa [#allocation4], 1 }
 0x779   :  { %2114 = vsyncpa [#allocation4 + $0x1], 1 }

</bundles_post_ra>
